<compile_context>
chip_gen: v7x
topology: tpu7x:2x2x1
jax: 0.10.0
libtpu: 0.0.40
codegen_flags: <defaults>
</compile_context>

<pallas_src>
import numpy as np
import jax
import jax.numpy as jnp
from jax import lax
from jax.experimental import pallas as pl
from jax.experimental.pallas import tpu as pltpu


def decoder_rnn_kernel(tokens_ref, xproj_ref, w_hh_ref, w_out_ref, b_out_ref,
                       h0_ref, c0_ref,
                       logp_ref, hN_ref, cN_ref):
    B, H = h0_ref.shape
    SB = tokens_ref.shape[0]
    S = SB // B

    # Hoisted loads: weights live in vregs across the whole recurrence.
    w_hh = w_hh_ref[...]          # (H, 4H) bf16
    b_out = b_out_ref[...]        # (1, Vp) f32

    def gather_x(t):
        # relu(emb[token]) @ w_ih.T + b, looked up per batch row from the
        # precomputed (V, 4H) table; B is a small static constant.
        rows = [xproj_ref[pl.ds(tokens_ref[t * B + b], 1), :] for b in range(B)]
        return rows[0] if B == 1 else jnp.concatenate(rows, axis=0)   # (B, 4H) f32

    def lstm_step(t, h, c):
        # Only h @ w_hh remains on the serial critical path (bf16 MXU, f32 acc).
        gates = gather_x(t) + jnp.dot(h.astype(jnp.bfloat16), w_hh,
                                      preferred_element_type=jnp.float32)   # (B, 4H) f32
        sig = jax.nn.sigmoid(gates)   # full-vreg EUP pass
        th = jnp.tanh(gates)          # full-vreg EUP pass
        i_g = sig[:, 0 * H:1 * H]
        f_g = sig[:, 1 * H:2 * H]
        g_g = th[:, 2 * H:3 * H]
        o_g = sig[:, 3 * H:4 * H]
        c_new = f_g * c + i_g * g_g
        h_new = o_g * jnp.tanh(c_new)
        return h_new, c_new

    # ---- step 0 (peeled): PyTorch feeds lstm_output[0] to the Linear head ----
    h1, c1 = lstm_step(0, h0_ref[...], c0_ref[...])

    # Linear + LogSoftmax(dim=1), issued before the remaining recurrence so the
    # MXU/EUP work can overlap it. Padded lanes carry a -1e30 bias -> exp() == 0.
    logits = jnp.dot(h1.astype(jnp.bfloat16), w_out_ref[...],
                     preferred_element_type=jnp.float32) + b_out             # (B, Vp)
    m = jnp.max(logits, axis=1, keepdims=True)
    shifted = logits - m
    lse = jnp.log(jnp.sum(jnp.exp(shifted), axis=1, keepdims=True))
    logp_ref[...] = shifted - lse

    # ---- remaining S-1 steps: state carried in registers, fully unrolled ----
    def body(t, carry):
        h, c = carry
        return lstm_step(t, h, c)

    hN, cN = lax.fori_loop(1, S, body, (h1, c1), unroll=True)
    hN_ref[...] = hN
    cN_ref[...] = cN


def decoder_rnn_forward(tokens, h0, c0, params):
    """tokens: (B, S) int32; h0, c0: (1, B, H) f32 (PyTorch layouts)."""
    B, S = tokens.shape
    assert S >= 1
    H = h0.shape[-1]
    emb = params["embedding"]                     # (V, H)
    V = emb.shape[0]
    Vp = ((V + 127) // 128) * 128                 # lane-dense head output width

    # Token-independent precompute: relu(embedding row) @ w_ih.T + (b_ih + b_hh).
    x_proj = (jnp.maximum(emb, 0.0) @ params["w_ih"].T
              + params["b_ih"] + params["b_hh"]).astype(jnp.float32)         # (V, 4H)

    w_hh_t = params["w_hh"].T.astype(jnp.bfloat16)                           # (H, 4H)

    # Output head padded to 128 lanes: zero weight + very negative bias in the pad
    # so padded columns never affect max / logsumexp.
    w_out_t = jnp.zeros((H, Vp), jnp.bfloat16).at[:, :V].set(
        params["w_out"].T.astype(jnp.bfloat16))
    b_out = jnp.full((1, Vp), -1e30, jnp.float32).at[0, :V].set(
        params["b_out"].astype(jnp.float32))

    # Flat 1-D time-major token array for SMEM (index = t*B + b). Clamp ids so an
    # out-of-range id cannot read adjacent VMEM (PyTorch would raise instead).
    tokens_flat = jnp.clip(tokens.T.reshape(-1).astype(jnp.int32), 0, V - 1)

    vmem = pl.BlockSpec(memory_space=pltpu.MemorySpace.VMEM)
    smem = pl.BlockSpec(memory_space=pltpu.MemorySpace.SMEM)

    # Single grid-less call: everything fits comfortably in VMEM at these sizes.
    # Scaling plan: for large V/H keep x_proj / w_out_t in HBM (memory_space=pl.ANY)
    # and tile the head over V; for large B on v7x add a batch grid axis with
    # dimension_semantics=("parallel",) so both TensorCores are used.
    logp_p, hN, cN = pl.pallas_call(
        decoder_rnn_kernel,
        out_shape=(jax.ShapeDtypeStruct((B, Vp), jnp.float32),
                   jax.ShapeDtypeStruct((B, H), jnp.float32),
                   jax.ShapeDtypeStruct((B, H), jnp.float32)),
        in_specs=[smem, vmem, vmem, vmem, vmem, vmem, vmem],
        out_specs=(vmem, vmem, vmem),
    )(tokens_flat, x_proj, w_hh_t, w_out_t, b_out, h0[0], c0[0])

    return logp_p[:, :V], (hN[None], cN[None])


def init_params(key, hidden_size, output_size):
    H, V = hidden_size, output_size
    s = 1.0 / np.sqrt(H)
    k = jax.random.split(key, 7)
    return {
        "embedding": jax.random.normal(k[0], (V, H), jnp.float32),
        "w_ih": jax.random.uniform(k[1], (4 * H, H), jnp.float32, -s, s),
        "w_hh": jax.random.uniform(k[2], (4 * H, H), jnp.float32, -s, s),
        "b_ih": jax.random.uniform(k[3], (4 * H,), jnp.float32, -s, s),
        "b_hh": jax.random.uniform(k[4], (4 * H,), jnp.float32, -s, s),
        "w_out": jax.random.uniform(k[5], (V, H), jnp.float32, -s, s),
        "b_out": jax.random.uniform(k[6], (V,), jnp.float32, -s, s),
    }


def reference_forward(tokens, h0, c0, p):
    """Pure-JAX f32 mirror of the PyTorch forward (for correctness check)."""
    H = h0.shape[-1]
    x = jnp.transpose(p["embedding"][tokens], (1, 0, 2))   # (S, B, H)
    x = jnp.maximum(x, 0.0)
    h, c = h0[0], c0[0]
    outs = []
    for t in range(x.shape[0]):
        gates = x[t] @ p["w_ih"].T + h @ p["w_hh"].T + p["b_ih"] + p["b_hh"]
        i = jax.nn.sigmoid(gates[:, :H]); f = jax.nn.sigmoid(gates[:, H:2 * H])
        g = jnp.tanh(gates[:, 2 * H:3 * H]); o = jax.nn.sigmoid(gates[:, 3 * H:])
        c = f * c + i * g
        h = o * jnp.tanh(c)
        outs.append(h)
    logits = outs[0] @ p["w_out"].T + p["b_out"]
    return jax.nn.log_softmax(logits, axis=1), (h[None], c[None])


if __name__ == "__main__":
    H, V, B, S = 32, 64, 2, 4
    key = jax.random.PRNGKey(0)
    kp, kt = jax.random.split(key)
    params = init_params(kp, H, V)
    tokens = jax.random.randint(kt, (B, S), 0, V, jnp.int32)
    h0 = jnp.zeros((1, B, H), jnp.float32)   # DecoderRNN.initHidden-style zeros
    c0 = jnp.zeros((1, B, H), jnp.float32)

    logp, (hN, cN) = decoder_rnn_forward(tokens, h0, c0, params)
    jax.block_until_ready((logp, hN, cN))

    ref_logp, (ref_h, ref_c) = reference_forward(tokens, h0, c0, params)
    # bf16 MXU operands (h, w_hh, w_out) with f32 accumulation -> slightly looser
    # tolerance than a pure-f32 pipeline; elementwise state math is f32.
    np.testing.assert_allclose(np.asarray(logp), np.asarray(ref_logp), rtol=1e-2, atol=1e-2)
    np.testing.assert_allclose(np.asarray(hN), np.asarray(ref_h), rtol=1e-2, atol=1e-2)
    np.testing.assert_allclose(np.asarray(cN), np.asarray(ref_c), rtol=1e-2, atol=1e-2)
    print("KERNEL_OK")
</pallas_src>

<mosaic_0001>
module attributes {stable_mosaic.version = 11 : i64} {
  func.func @decoder_rnn_kernel(%arg0: memref<8xi32, #tpu.memory_space<smem>>, %arg1: memref<64x128xf32, #tpu.memory_space<vmem>>, %arg2: memref<32x128xbf16, #tpu.memory_space<vmem>>, %arg3: memref<32x128xbf16, #tpu.memory_space<vmem>>, %arg4: memref<1x128xf32, #tpu.memory_space<vmem>>, %arg5: memref<2x32xf32, #tpu.memory_space<vmem>>, %arg6: memref<2x32xf32, #tpu.memory_space<vmem>>, %arg7: memref<2x128xf32, #tpu.memory_space<vmem>>, %arg8: memref<2x32xf32, #tpu.memory_space<vmem>>, %arg9: memref<2x32xf32, #tpu.memory_space<vmem>>) attributes {dimension_semantics = [], scalar_prefetch = 0 : i64, scratch_operands = 0 : i64, tpu.core_type = #tpu.core_type<tc>} {
    %c0 = arith.constant 0 : index
    %c0_0 = arith.constant 0 : index
    %0 = vector.load %arg2[%c0, %c0_0] : memref<32x128xbf16, #tpu.memory_space<vmem>>, vector<32x128xbf16>
    %c0_1 = arith.constant 0 : index
    %c0_2 = arith.constant 0 : index
    %1 = vector.load %arg4[%c0_1, %c0_2] : memref<1x128xf32, #tpu.memory_space<vmem>>, vector<1x128xf32>
    %c0_3 = arith.constant 0 : index
    %c0_4 = arith.constant 0 : index
    %2 = vector.load %arg5[%c0_3, %c0_4] : memref<2x32xf32, #tpu.memory_space<vmem>>, vector<2x32xf32>
    %c0_5 = arith.constant 0 : index
    %c0_6 = arith.constant 0 : index
    %3 = vector.load %arg6[%c0_5, %c0_6] : memref<2x32xf32, #tpu.memory_space<vmem>>, vector<2x32xf32>
    %c0_7 = arith.constant 0 : index
    %4 = memref.load %arg0[%c0_7] : memref<8xi32, #tpu.memory_space<smem>>
    %5 = arith.index_cast %4 : i32 to index
    %c0_8 = arith.constant 0 : index
    %6 = vector.load %arg1[%5, %c0_8] : memref<64x128xf32, #tpu.memory_space<vmem>>, vector<1x128xf32>
    %c1 = arith.constant 1 : index
    %7 = memref.load %arg0[%c1] : memref<8xi32, #tpu.memory_space<smem>>
    %8 = arith.index_cast %7 : i32 to index
    %c0_9 = arith.constant 0 : index
    %9 = vector.load %arg1[%8, %c0_9] : memref<64x128xf32, #tpu.memory_space<vmem>>, vector<1x128xf32>
    %10 = tpu.concatenate %6, %9 in 0 : vector<1x128xf32>, vector<1x128xf32> -> vector<2x128xf32>
    %11 = arith.truncf %2 : vector<2x32xf32> to vector<2x32xbf16>
    %cst = arith.constant dense<0.000000e+00> : vector<2x128xf32>
    %12 = tpu.matmul %11, %0, %cst {dimension_numbers = #tpu.dot_dimension_numbers<[1], [0], [0], [1], [0, 0, 1, 1], [], []>} : vector<2x32xbf16>, vector<32x128xbf16>, vector<2x128xf32> -> vector<2x128xf32>
    %13 = arith.addf %10, %12 : vector<2x128xf32>
    %14 = arith.negf %13 : vector<2x128xf32>
    %15 = math.exp %14 : vector<2x128xf32>
    %cst_10 = arith.constant 1.000000e+00 : f32
    %16 = vector.broadcast %cst_10 : f32 to vector<2x128xf32>
    %17 = arith.addf %16, %15 : vector<2x128xf32>
    %18 = arith.divf %16, %17 : vector<2x128xf32>
    %19 = math.tanh %13 : vector<2x128xf32>
    %20 = vector.extract_strided_slice %18 {offsets = [0, 0], sizes = [2, 32], strides = [1, 1]} : vector<2x128xf32> to vector<2x32xf32>
    %21 = vector.extract_strided_slice %18 {offsets = [0, 32], sizes = [2, 32], strides = [1, 1]} : vector<2x128xf32> to vector<2x32xf32>
    %22 = vector.extract_strided_slice %19 {offsets = [0, 64], sizes = [2, 32], strides = [1, 1]} : vector<2x128xf32> to vector<2x32xf32>
    %23 = vector.extract_strided_slice %18 {offsets = [0, 96], sizes = [2, 32], strides = [1, 1]} : vector<2x128xf32> to vector<2x32xf32>
    %24 = arith.mulf %21, %3 : vector<2x32xf32>
    %25 = arith.mulf %20, %22 : vector<2x32xf32>
    %26 = arith.addf %24, %25 : vector<2x32xf32>
    %27 = math.tanh %26 : vector<2x32xf32>
    %28 = arith.mulf %23, %27 : vector<2x32xf32>
    %29 = arith.truncf %28 : vector<2x32xf32> to vector<2x32xbf16>
    %c0_11 = arith.constant 0 : index
    %c0_12 = arith.constant 0 : index
    %30 = vector.load %arg3[%c0_11, %c0_12] : memref<32x128xbf16, #tpu.memory_space<vmem>>, vector<32x128xbf16>
    %cst_13 = arith.constant dense<0.000000e+00> : vector<2x128xf32>
    %31 = tpu.matmul %29, %30, %cst_13 {dimension_numbers = #tpu.dot_dimension_numbers<[1], [0], [0], [1], [0, 0, 1, 1], [], []>} : vector<2x32xbf16>, vector<32x128xbf16>, vector<2x128xf32> -> vector<2x128xf32>
    %32 = vector.broadcast %1 : vector<1x128xf32> to vector<2x128xf32>
    %33 = arith.addf %31, %32 : vector<2x128xf32>
    %cst_14 = arith.constant dense<0xFF800000> : vector<2xf32>
    %34 = vector.multi_reduction <maximumf>, %33, %cst_14 [1] : vector<2x128xf32> to vector<2xf32>
    %35 = vector.shape_cast %34 : vector<2xf32> to vector<2x1xf32>
    %36 = vector.broadcast %35 : vector<2x1xf32> to vector<2x128xf32>
    %37 = arith.subf %33, %36 : vector<2x128xf32>
    %38 = math.exp %37 : vector<2x128xf32>
    %cst_15 = arith.constant dense<0.000000e+00> : vector<2xf32>
    %39 = vector.multi_reduction <add>, %38, %cst_15 [1] : vector<2x128xf32> to vector<2xf32>
    %40 = vector.shape_cast %39 : vector<2xf32> to vector<2x1xf32>
    %41 = math.log %40 : vector<2x1xf32>
    %42 = vector.broadcast %41 : vector<2x1xf32> to vector<2x128xf32>
    %43 = arith.subf %37, %42 : vector<2x128xf32>
    %c0_16 = arith.constant 0 : index
    %c0_17 = arith.constant 0 : index
    %44 = vector.load %arg7[%c0_16, %c0_17] : memref<2x128xf32, #tpu.memory_space<vmem>>, vector<2x128xf32>
    tpu.vector_store %arg7[%c0_16, %c0_17], %43 {strides = array<i32>} : memref<2x128xf32, #tpu.memory_space<vmem>>, vector<2x128xf32>,
    %c1_i32 = arith.constant 1 : i32
    %c2_i32 = arith.constant 2 : i32
    %45 = arith.muli %c1_i32, %c2_i32 : i32
    %c0_i32 = arith.constant 0 : i32
    %46 = arith.addi %45, %c0_i32 : i32
    %47 = arith.index_cast %46 : i32 to index
    %48 = memref.load %arg0[%47] : memref<8xi32, #tpu.memory_space<smem>>
    %49 = arith.index_cast %48 : i32 to index
    %c0_18 = arith.constant 0 : index
    %50 = vector.load %arg1[%49, %c0_18] : memref<64x128xf32, #tpu.memory_space<vmem>>, vector<1x128xf32>
    %c2_i32_19 = arith.constant 2 : i32
    %51 = arith.muli %c1_i32, %c2_i32_19 : i32
    %c1_i32_20 = arith.constant 1 : i32
    %52 = arith.addi %51, %c1_i32_20 : i32
    %53 = arith.index_cast %52 : i32 to index
    %54 = memref.load %arg0[%53] : memref<8xi32, #tpu.memory_space<smem>>
    %55 = arith.index_cast %54 : i32 to index
    %c0_21 = arith.constant 0 : index
    %56 = vector.load %arg1[%55, %c0_21] : memref<64x128xf32, #tpu.memory_space<vmem>>, vector<1x128xf32>
    %57 = tpu.concatenate %50, %56 in 0 : vector<1x128xf32>, vector<1x128xf32> -> vector<2x128xf32>
    %58 = arith.truncf %28 : vector<2x32xf32> to vector<2x32xbf16>
    %cst_22 = arith.constant dense<0.000000e+00> : vector<2x128xf32>
    %59 = tpu.matmul %58, %0, %cst_22 {dimension_numbers = #tpu.dot_dimension_numbers<[1], [0], [0], [1], [0, 0, 1, 1], [], []>} : vector<2x32xbf16>, vector<32x128xbf16>, vector<2x128xf32> -> vector<2x128xf32>
    %60 = arith.addf %57, %59 : vector<2x128xf32>
    %61 = arith.negf %60 : vector<2x128xf32>
    %62 = math.exp %61 : vector<2x128xf32>
    %cst_23 = arith.constant 1.000000e+00 : f32
    %63 = vector.broadcast %cst_23 : f32 to vector<2x128xf32>
    %64 = arith.addf %63, %62 : vector<2x128xf32>
    %65 = arith.divf %63, %64 : vector<2x128xf32>
    %66 = math.tanh %60 : vector<2x128xf32>
    %67 = vector.extract_strided_slice %65 {offsets = [0, 0], sizes = [2, 32], strides = [1, 1]} : vector<2x128xf32> to vector<2x32xf32>
    %68 = vector.extract_strided_slice %65 {offsets = [0, 32], sizes = [2, 32], strides = [1, 1]} : vector<2x128xf32> to vector<2x32xf32>
    %69 = vector.extract_strided_slice %66 {offsets = [0, 64], sizes = [2, 32], strides = [1, 1]} : vector<2x128xf32> to vector<2x32xf32>
    %70 = vector.extract_strided_slice %65 {offsets = [0, 96], sizes = [2, 32], strides = [1, 1]} : vector<2x128xf32> to vector<2x32xf32>
    %71 = arith.mulf %68, %26 : vector<2x32xf32>
    %72 = arith.mulf %67, %69 : vector<2x32xf32>
    %73 = arith.addf %71, %72 : vector<2x32xf32>
    %74 = math.tanh %73 : vector<2x32xf32>
    %75 = arith.mulf %70, %74 : vector<2x32xf32>
    %c2_i32_24 = arith.constant 2 : i32
    %c2_i32_25 = arith.constant 2 : i32
    %76 = arith.muli %c2_i32_24, %c2_i32_25 : i32
    %c0_i32_26 = arith.constant 0 : i32
    %77 = arith.addi %76, %c0_i32_26 : i32
    %78 = arith.index_cast %77 : i32 to index
    %79 = memref.load %arg0[%78] : memref<8xi32, #tpu.memory_space<smem>>
    %80 = arith.index_cast %79 : i32 to index
    %c0_27 = arith.constant 0 : index
    %81 = vector.load %arg1[%80, %c0_27] : memref<64x128xf32, #tpu.memory_space<vmem>>, vector<1x128xf32>
    %c2_i32_28 = arith.constant 2 : i32
    %82 = arith.muli %c2_i32_24, %c2_i32_28 : i32
    %c1_i32_29 = arith.constant 1 : i32
    %83 = arith.addi %82, %c1_i32_29 : i32
    %84 = arith.index_cast %83 : i32 to index
    %85 = memref.load %arg0[%84] : memref<8xi32, #tpu.memory_space<smem>>
    %86 = arith.index_cast %85 : i32 to index
    %c0_30 = arith.constant 0 : index
    %87 = vector.load %arg1[%86, %c0_30] : memref<64x128xf32, #tpu.memory_space<vmem>>, vector<1x128xf32>
    %88 = tpu.concatenate %81, %87 in 0 : vector<1x128xf32>, vector<1x128xf32> -> vector<2x128xf32>
    %89 = arith.truncf %75 : vector<2x32xf32> to vector<2x32xbf16>
    %cst_31 = arith.constant dense<0.000000e+00> : vector<2x128xf32>
    %90 = tpu.matmul %89, %0, %cst_31 {dimension_numbers = #tpu.dot_dimension_numbers<[1], [0], [0], [1], [0, 0, 1, 1], [], []>} : vector<2x32xbf16>, vector<32x128xbf16>, vector<2x128xf32> -> vector<2x128xf32>
    %91 = arith.addf %88, %90 : vector<2x128xf32>
    %92 = arith.negf %91 : vector<2x128xf32>
    %93 = math.exp %92 : vector<2x128xf32>
    %cst_32 = arith.constant 1.000000e+00 : f32
    %94 = vector.broadcast %cst_32 : f32 to vector<2x128xf32>
    %95 = arith.addf %94, %93 : vector<2x128xf32>
    %96 = arith.divf %94, %95 : vector<2x128xf32>
    %97 = math.tanh %91 : vector<2x128xf32>
    %98 = vector.extract_strided_slice %96 {offsets = [0, 0], sizes = [2, 32], strides = [1, 1]} : vector<2x128xf32> to vector<2x32xf32>
    %99 = vector.extract_strided_slice %96 {offsets = [0, 32], sizes = [2, 32], strides = [1, 1]} : vector<2x128xf32> to vector<2x32xf32>
    %100 = vector.extract_strided_slice %97 {offsets = [0, 64], sizes = [2, 32], strides = [1, 1]} : vector<2x128xf32> to vector<2x32xf32>
    %101 = vector.extract_strided_slice %96 {offsets = [0, 96], sizes = [2, 32], strides = [1, 1]} : vector<2x128xf32> to vector<2x32xf32>
    %102 = arith.mulf %99, %73 : vector<2x32xf32>
    %103 = arith.mulf %98, %100 : vector<2x32xf32>
    %104 = arith.addf %102, %103 : vector<2x32xf32>
    %105 = math.tanh %104 : vector<2x32xf32>
    %106 = arith.mulf %101, %105 : vector<2x32xf32>
    %c3_i32 = arith.constant 3 : i32
    %c2_i32_33 = arith.constant 2 : i32
    %107 = arith.muli %c3_i32, %c2_i32_33 : i32
    %c0_i32_34 = arith.constant 0 : i32
    %108 = arith.addi %107, %c0_i32_34 : i32
    %109 = arith.index_cast %108 : i32 to index
    %110 = memref.load %arg0[%109] : memref<8xi32, #tpu.memory_space<smem>>
    %111 = arith.index_cast %110 : i32 to index
    %c0_35 = arith.constant 0 : index
    %112 = vector.load %arg1[%111, %c0_35] : memref<64x128xf32, #tpu.memory_space<vmem>>, vector<1x128xf32>
    %c2_i32_36 = arith.constant 2 : i32
    %113 = arith.muli %c3_i32, %c2_i32_36 : i32
    %c1_i32_37 = arith.constant 1 : i32
    %114 = arith.addi %113, %c1_i32_37 : i32
    %115 = arith.index_cast %114 : i32 to index
    %116 = memref.load %arg0[%115] : memref<8xi32, #tpu.memory_space<smem>>
    %117 = arith.index_cast %116 : i32 to index
    %c0_38 = arith.constant 0 : index
    %118 = vector.load %arg1[%117, %c0_38] : memref<64x128xf32, #tpu.memory_space<vmem>>, vector<1x128xf32>
    %119 = tpu.concatenate %112, %118 in 0 : vector<1x128xf32>, vector<1x128xf32> -> vector<2x128xf32>
    %120 = arith.truncf %106 : vector<2x32xf32> to vector<2x32xbf16>
    %cst_39 = arith.constant dense<0.000000e+00> : vector<2x128xf32>
    %121 = tpu.matmul %120, %0, %cst_39 {dimension_numbers = #tpu.dot_dimension_numbers<[1], [0], [0], [1], [0, 0, 1, 1], [], []>} : vector<2x32xbf16>, vector<32x128xbf16>, vector<2x128xf32> -> vector<2x128xf32>
    %122 = arith.addf %119, %121 : vector<2x128xf32>
    %123 = arith.negf %122 : vector<2x128xf32>
    %124 = math.exp %123 : vector<2x128xf32>
    %cst_40 = arith.constant 1.000000e+00 : f32
    %125 = vector.broadcast %cst_40 : f32 to vector<2x128xf32>
    %126 = arith.addf %125, %124 : vector<2x128xf32>
    %127 = arith.divf %125, %126 : vector<2x128xf32>
    %128 = math.tanh %122 : vector<2x128xf32>
    %129 = vector.extract_strided_slice %127 {offsets = [0, 0], sizes = [2, 32], strides = [1, 1]} : vector<2x128xf32> to vector<2x32xf32>
    %130 = vector.extract_strided_slice %127 {offsets = [0, 32], sizes = [2, 32], strides = [1, 1]} : vector<2x128xf32> to vector<2x32xf32>
    %131 = vector.extract_strided_slice %128 {offsets = [0, 64], sizes = [2, 32], strides = [1, 1]} : vector<2x128xf32> to vector<2x32xf32>
    %132 = vector.extract_strided_slice %127 {offsets = [0, 96], sizes = [2, 32], strides = [1, 1]} : vector<2x128xf32> to vector<2x32xf32>
    %133 = arith.mulf %130, %104 : vector<2x32xf32>
    %134 = arith.mulf %129, %131 : vector<2x32xf32>
    %135 = arith.addf %133, %134 : vector<2x32xf32>
    %136 = math.tanh %135 : vector<2x32xf32>
    %137 = arith.mulf %132, %136 : vector<2x32xf32>
    %c3_i32_41 = arith.constant 3 : i32
    %c0_42 = arith.constant 0 : index
    %c0_43 = arith.constant 0 : index
    %138 = vector.load %arg8[%c0_42, %c0_43] : memref<2x32xf32, #tpu.memory_space<vmem>>, vector<2x32xf32>
    tpu.vector_store %arg8[%c0_42, %c0_43], %137 {strides = array<i32>} : memref<2x32xf32, #tpu.memory_space<vmem>>, vector<2x32xf32>,
    %c0_44 = arith.constant 0 : index
    %c0_45 = arith.constant 0 : index
    %139 = vector.load %arg9[%c0_44, %c0_45] : memref<2x32xf32, #tpu.memory_space<vmem>>, vector<2x32xf32>
    tpu.vector_store %arg9[%c0_44, %c0_45], %135 {strides = array<i32>} : memref<2x32xf32, #tpu.memory_space<vmem>>, vector<2x32xf32>,
    return
  }
}

</mosaic_0001>

<bundles_post_ra>
// kernel: tpu_custom_call.1
= control target key start
LH: loop header
LB: loop body
LE: loop exit
PB: predicated region body
PF: predicated region fallthrough
CT: control target
= control target key end

     0   :  { %15 = vsyncpa [#allocation5], 0  ;;  %s1085_s0 = inlined_call_operand.hbm [shape: s32[8], index: 0, kind: input, shape index: {}]   ;;  %s1086_s1 = inlined_call_operand.hbm [shape: f32[64,128], index: 1, kind: input, shape index: {}]   ;;  %s1087_s2 = inlined_call_operand.hbm [shape: bf16[32,128], index: 2, kind: input, shape index: {}]   ;;  %s1088_s3 = inlined_call_operand.hbm [shape: bf16[32,128], index: 3, kind: input, shape index: {}]   ;;  %s1089_s4 = inlined_call_operand.vmem [shape: f32[1,128], index: 4, kind: input, shape index: {}]   ;;  %s1090_s5 = inlined_call_operand.vmem [shape: f32[2,32], index: 5, kind: input, shape index: {}]   ;;  %s1091_s6 = inlined_call_operand.vmem [shape: f32[2,32], index: 6, kind: input, shape index: {}]   ;;  %s1092_s7 = inlined_call_operand.hbm [shape: f32[2,128], index: 7, kind: output, shape index: {0}]   ;;  %s1093_s8 = inlined_call_operand.hbm [shape: f32[2,32], index: 8, kind: output, shape index: {1}]   ;;  %s1094_s9 = inlined_call_operand.hbm [shape: f32[2,32], index: 9, kind: output, shape index: {2}]  }
   0x1   :  { %16 = vsyncpa [#allocation3], 0 }
   0x2   :  { %17 = vsyncpa [#allocation8], 0 }
   0x3   :  { %18 = vsyncpa [#allocation4], 0 }
   0x4   :  { %19 = vsyncpa [#allocation12], 0  ;;  %s856_s30 = smov [#allocation7]   ;;  %s704_s13 = scalar_lea.hbm %s1087_s2, 256 }
   0x5   :  { %s45_s10 = sshll.u32 %s856_s30, 4  ;;  %p705_p0 = scmp.ne.s32.totalorder %s1087_s2, %s704_s13  ;;  %s46_s10 = int_to_ptr.vmem [resolvable:$true] %s45_s10 }
   0x6   :  { %p708_p1 = scmp.lt.u32.totalorder %s704_s13, %s1087_s2 }
   0x8   :  { %p710_p2 = pnand %p708_p1, %p705_p0 }
   0xa   :  { %713 = shalt.err (!%p710_p2)
}
   0xb   :  { %s714_s18 = scalar_lea.vmem %s46_s10, 256  ;;  %p719_p4 = scmp.lt.s32.totalorder %s46_s10, %s46_s10 }
   0xc   :  { %p715_p3 = scmp.ne.s32.totalorder %s46_s10, %s714_s18  ;;  %p720_p5 = scmp.lt.s32.totalorder %s714_s18, %s714_s18 }
   0xe   :  { %p721_p6 = por %p720_p5, %p719_p4 }
  0x10   :  { %p722_p7 = pnand %p721_p6, %p715_p3 }
  0x12   :  { %725 = shalt.err (!%p722_p7)
}
  0x13   :  { %s857_s19 = smov 64   ;;  %s858_s20 = smov 4  }
  0x14   :  { %51 = dma.hbm_to_vmem [thread:$0]  %s1087_s2, 256, %s46_s10, [#allocation8], %s857_s19, %s857_s19, %s858_s20  }
  0x15   :  { %s726_s25 = scalar_lea.hbm %s1085_s0, 16 }
  0x16   :  { %p727_p8 = scmp.ne.s32.totalorder %s1085_s0, %s726_s25  ;;  %p730_p9 = scmp.lt.u32.totalorder %s726_s25, %s1085_s0 }
  0x18   :  { %p732_p10 = pnand %p730_p9, %p727_p8 }
  0x1a   :  { %735 = shalt.err (!%p732_p10)
}
  0x1b   :  { %s859_s30 = smov [#allocation2]   ;;  %s860_s2 = smov [#allocation6]  }
  0x1c   :  { %27 = dma.hbm_to_smem %s1085_s0, 16, %s859_s30, [#allocation5]  }
  0x1d   :  { %s33_s10 = sshll.u32 %s860_s2, 4  ;;  %s736_s15 = scalar_lea.hbm %s1086_s1, 1024  ;;  %s34_s10 = int_to_ptr.vmem [resolvable:$true] %s33_s10 }
  0x1e   :  { %p737_p11 = scmp.ne.s32.totalorder %s1086_s1, %s736_s15  ;;  %p740_p12 = scmp.lt.u32.totalorder %s736_s15, %s1086_s1 }
  0x20   :  { %p742_p13 = pnand %p740_p12, %p737_p11 }
  0x22   :  { %745 = shalt.err (!%p742_p13)
}
  0x23   :  { %s746_s22 = scalar_lea.vmem %s34_s10, 1024  ;;  %p751_p1 = scmp.lt.s32.totalorder %s34_s10, %s34_s10 }
  0x24   :  { %p747_p0 = scmp.ne.s32.totalorder %s34_s10, %s746_s22  ;;  %p752_p2 = scmp.lt.s32.totalorder %s746_s22, %s746_s22 }
  0x26   :  { %p753_p3 = por %p752_p2, %p751_p1 }
  0x28   :  { %p754_p4 = pnand %p753_p3, %p747_p0 }
  0x2a   :  { %757 = shalt.err (!%p754_p4)
}
  0x2b   :  { %s861_s0 = smov 128   ;;  %s862_s23 = smov 8  }
  0x2c   :  { %39 = dma.hbm_to_vmem [thread:$0]  %s1086_s1, 1024, %s34_s10, [#allocation3], %s861_s0, %s861_s0, %s862_s23  }
  0x2d   :  { %s863_s26 = smov [#allocation9]   ;;  %s758_s30 = scalar_lea.hbm %s1088_s3, 256 }
  0x2e   :  { %s57_s27 = sshll.u32 %s863_s26, 4  ;;  %p759_p5 = scmp.ne.s32.totalorder %s1088_s3, %s758_s30  ;;  %s58_s27 = int_to_ptr.vmem [resolvable:$true] %s57_s27 }
  0x2f   :  { %p762_p6 = scmp.lt.u32.totalorder %s758_s30, %s1088_s3 }
  0x31   :  { %p764_p7 = pnand %p762_p6, %p759_p5 }
  0x33   :  { %767 = shalt.err (!%p764_p7)
}
  0x34   :  { %s768_s14 = scalar_lea.vmem %s58_s27, 256  ;;  %p773_p9 = scmp.lt.s32.totalorder %s58_s27, %s58_s27 }
  0x35   :  { %p769_p8 = scmp.ne.s32.totalorder %s58_s27, %s768_s14  ;;  %p774_p10 = scmp.lt.s32.totalorder %s768_s14, %s768_s14 }
  0x37   :  { %p775_p11 = por %p774_p10, %p773_p9 }
  0x39   :  { %p776_p12 = pnand %p775_p11, %p769_p8 }
  0x3b   :  { %779 = shalt.err (!%p776_p12)
}
  0x3c   :  { %63 = dma.hbm_to_vmem [thread:$0]  %s1088_s3, 256, %s58_s27, [#allocation8], %s857_s19, %s857_s19, %s858_s20  }
  0x3d   :  { %846 = dma.done.wait [#allocation5], 16  }
  0x3e   :  { %847 = vsyncadd [#allocation5], 4294967280 }
  0x3f   :  { %848 = dma.done.wait [#allocation3], 1024  }
  0x40   :  { %849 = vsyncadd [#allocation3], 4294966272 }
  0x41   :  { %850 = dma.done.wait [#allocation8], 512  }
  0x42   :  { %851 = vsyncadd [#allocation8], 4294966784 }
  0x43   :  { %82 = sfence }
  0x44   :  { %v975_v0 = vld [vmem:[#allocation7] sm:$0xff]   ;;  %v864_v1 = vmov 0.0   ;;  %v980_v2 = vld [vmem:[#allocation7 + $0x8] sm:$0xff]   ;;  %vm865_vm0 = vmmov 0   ;;  %v89_v3 = vld [vmem:[%s1090_s5] sm:$0x3] }
  0x45   :  { %609 = vmatprep.subr.bf16.mxu0 %v864_v1  ;;  %617 = vmatprep.subr.bf16.mxu1 %v864_v1  ;;  %v102_v4 = vpack.c.bf16 %v89_v3, %v89_v3  ;;  %vm115_vm1 = vcmask 261120   ;;  %s573_s5 = sld [smem:[#allocation2 + $0x1]]  ;;  %s91_s15 = sld [smem:[#allocation2]]  ;;  %vm100_vm2 = vcmask 1040384   ;;  %v90_v15 = vld [vmem:[%s1091_s6] sm:$0x3] }
  0x46   :  { %610 = vmatpush3.bf16.msra.mxu0 %v975_v0  ;;  %613 = vmatprep.mubr.msk.bf16.mxu0 %vm865_vm0, %v864_v1  ;;  %s866_s22 = smov 32   ;;  %v666_v26 = vld [vmem:[#allocation9] sm:$0xff]   ;;  %v667_v27 = vld [vmem:[#allocation9 + $0x8] sm:$0xff]   ;;  %s583_s6 = sld [smem:[#allocation2 + $0x3]]  ;;  %vm257_vm3 = vcmask 1041408   ;;  %vm514_vm4 = vcmask 254976  }
  0x47   :  { %611 = vmatprep.subr.bf16.mxu0 %v864_v1  ;;  %621 = vmatprep.mubr.msk.bf16.mxu1 %vm865_vm0, %v864_v1  ;;  %s582_s0 = sld [smem:[#allocation2 + $0x2]]  ;;  %s587_s25 = sld [smem:[#allocation2 + $0x5]] }
  0x48   :  { %618 = vmatpush3.bf16.msra.mxu1 %v666_v26  ;;  %s586_s26 = sld [smem:[#allocation2 + $0x4]]  ;;  %s591_s29 = sld [smem:[#allocation2 + $0x7]] }
  0x49   :  { %619 = vmatprep.subr.bf16.mxu1 %v864_v1  ;;  %s590_s30 = sld [smem:[#allocation2 + $0x6]] }
  0x4a   :  { %612 = vmatpush3.bf16.msra.mxu0 %v980_v2 }
  0x4b   :  { %625 = vmatprep.subr.bf16.mxu0 %v864_v1  ;;  %s95_s16 = scalar_lea.vmem [#allocation6], %s573_s5  ;;  %s92_s17 = scalar_lea.vmem [#allocation6], %s91_s15 }
  0x4c   :  { %v96_v5 = vld [vmem:[%s95_s16] sm:$0x1]  ;;  %620 = vmatpush3.bf16.msra.mxu1 %v667_v27  ;;  %s275_s23 = scalar_lea.vmem [#allocation6], %s583_s6 }
  0x4d   :  { %614 = vmatmul.mubr.msk.bf16.vlgmr.msra.gmra.mrb[0].mxu0 %vm115_vm1, %v102_v4  ;;  %v98_v6 = vrot.slane %v96_v5, 7  ;;  %v93_v7 = vld [vmem:[%s92_s17] sm:$0x1]  ;;  %633 = vmatprep.subr.bf16.mxu1 %v864_v1  ;;  %s272_s24 = scalar_lea.vmem [#allocation6], %s582_s0  ;;  %s350_s27 = scalar_lea.vmem [#allocation6], %s587_s25 }
  0x4e   :  { %626 = vmatpush3.bf16.msra.mxu0 %v975_v0  ;;  %629 = vmatprep.mubr.msk.bf16.mxu0 %vm865_vm0, %v864_v1  ;;  %v276_v33 = vld [vmem:[%s275_s23] sm:$0x1]  ;;  %s347_s28 = scalar_lea.vmem [#allocation6], %s586_s26  ;;  %s432_s11 = scalar_lea.vmem [#allocation6], %s591_s29 }
  0x4f   :  { %627 = vmatprep.subr.bf16.mxu0 %v864_v1  ;;  %v101_v8 = vsel %vm100_vm2, %v93_v7, %v98_v6  ;;  %v278_v34 = vrot.slane %v276_v33, 7  ;;  %v273_v35 = vld [vmem:[%s272_s24] sm:$0x1]  ;;  %s429_s12 = scalar_lea.vmem [#allocation6], %s590_s30 }
  0x50   :  { %v351_v61 = vld [vmem:[%s350_s27] sm:$0x1] }
  0x51   :  { %v280_v36 = vsel %vm100_vm2, %v273_v35, %v278_v34  ;;  %v353_v62 = vrot.slane %v351_v61, 7  ;;  %v348_v63 = vld [vmem:[%s347_s28] sm:$0x1] }
  0x52   :  { %628 = vmatpush3.bf16.msra.mxu0 %v980_v2 }
  0x53   :  { %641 = vmatprep.subr.bf16.mxu0 %v864_v1 }
 0x120   :  { %v153_v9 = vpop.f32.mrb[0].mxu0 }
 0x121   :  { %v159_v10 = vadd.f32 %v153_v9, %v101_v8  ;;  %v615_v11 = vpop.f32.mrb[1].mxu0 }
 0x122   :  { %v156_v12 = vpop.f32.mrb[2].mxu0 }
 0x123   :  { %v616_v13 = vpop.f32.mrb[3].mxu0  ;;  %668 = vtanh.f32 %v159_v10  ;;  %v577_v16 = vmul.f32 -1.442695, %v159_v10 }
 0x125   :  { %670 = vpow2.f32 %v577_v16 }
 0x12d   :  { %v669_v14 = vpop.eup %668 }
 0x12e   :  { %173 = vrot.lane.b32.xlu0 %v669_v14, %s857_s19 }
 0x12f   :  { %v671_v17 = vpop.eup %670 }
 0x130   :  { %v163_v18 = vadd.f32 1.0, %v671_v17 }
 0x132   :  { %168 = vrot.lane.b32.xlu0 %v90_v15, %s866_s22  ;;  %672 = vrcp.f32 %v163_v18 }
 0x13c   :  { %v673_v19 = vpop.eup %672 }
 0x1a0   :  { %v174_v20 = vpop.permute.xlu0 %173 }
 0x1a1   :  { %v176_v21 = vmul.f32 %v673_v19, %v174_v20 }
 0x1a3   :  { %178 = vrot.lane.b32.xlu1 %v176_v21, %s866_s22  ;;  %v433_v21 = vld [vmem:[%s432_s11] sm:$0x1] }
 0x1a4   :  { %v169_v22 = vpop.permute.xlu0 %168 }
 0x1a5   :  { %v171_v23 = vmul.f32 %v673_v19, %v169_v22  ;;  %v435_v22 = vrot.slane %v433_v21, 7 }
 0x215   :  { %v179_v24 = vpop.permute.xlu1 %178 }
 0x216   :  { %v181_v25 = vadd.f32 %v179_v24, %v171_v23  ;;  %v430_v23 = vld [vmem:[%s429_s12] sm:$0x1] }
 0x217   :  { %v437_v24 = vsel %vm100_vm2, %v430_v23, %v435_v22 }
 0x218   :  { %674 = vtanh.f32 %v181_v25 }
 0x222   :  { %v675_v28 = vpop.eup %674 }
 0x223   :  { %184 = vrot.lane.b32.xlu1 %v675_v28, %s857_s19 }
 0x295   :  { %v185_v29 = vpop.permute.xlu1 %184 }
 0x296   :  { %v187_v30 = vmul.f32 %v673_v19, %v185_v29 }
 0x298   :  { %v188_v31 = vpack.c.bf16 %v187_v30, %v187_v30 }
 0x29a   :  { %200 = vrot.lane.b32.xlu0 %v188_v31, %s866_s22  ;;  %v578_v31 = vld [vmem:[%s1089_s4] ss:$0 sm:$0xff]  ;;  %s867_s4 = smov 96  }
 0x30c   :  { %v201_v32 = vpop.permute.xlu0 %200 }
 0x30d   :  { %622 = vmatmul.mubr.msk.bf16.vlgmr.msra.gmra.mrb[0].mxu1 %vm115_vm1, %v201_v32  ;;  %630 = vmatmul.mubr.msk.bf16.vlgmr.msra.gmra.mrb[4].mxu0 %vm115_vm1, %v201_v32 }
 0x30e   :  { %634 = vmatpush3.bf16.msra.mxu1 %v975_v0  ;;  %637 = vmatprep.mubr.msk.bf16.mxu1 %vm865_vm0, %v864_v1 }
 0x30f   :  { %635 = vmatprep.subr.bf16.mxu1 %v864_v1  ;;  %642 = vmatpush3.bf16.msra.mxu0 %v975_v0  ;;  %v355_v0 = vsel %vm100_vm2, %v348_v63, %v353_v62 }
 0x310   :  { %643 = vmatprep.subr.bf16.mxu0 %v864_v1  ;;  %645 = vmatprep.mubr.msk.bf16.mxu0 %vm865_vm0, %v864_v1 }
 0x312   :  { %636 = vmatpush3.bf16.msra.mxu1 %v980_v2 }
 0x313   :  { %644 = vmatpush3.bf16.msra.mxu0 %v980_v2 }
 0x3e0   :  { %v1023_v37 = vpop.f32.mrb[0].mxu1  ;;  %v315_v38 = vpop.f32.mrb[4].mxu0 }
 0x3e1   :  { %v321_v39 = vadd.f32 %v315_v38, %v280_v36  ;;  %v623_v40 = vpop.f32.mrb[1].mxu1  ;;  %v631_v41 = vpop.f32.mrb[5].mxu0  ;;  %v252_v32 = vadd.f32 %v578_v31, %v1023_v37 }
 0x3e2   :  { %v254_v42 = vpop.f32.mrb[2].mxu1  ;;  %v318_v43 = vpop.f32.mrb[6].mxu0 }
 0x3e3   :  { %676 = vtanh.f32 %v321_v39  ;;  %v624_v44 = vpop.f32.mrb[3].mxu1  ;;  %v632_v45 = vpop.f32.mrb[7].mxu0  ;;  %v585_v47 = vmul.f32 -1.442695, %v321_v39  ;;  %v258_v33 = vsel %vm257_vm3, %v252_v32, -inf }
 0x3e5   :  { %678 = vpow2.f32 %v585_v47 }
 0x3ed   :  { %v677_v46 = vpop.eup %676 }
 0x3ee   :  { %331 = vrot.lane.b32.xlu1 %v677_v46, %s857_s19 }
 0x3ef   :  { %v679_v48 = vpop.eup %678 }
 0x3f0   :  { %v325_v49 = vadd.f32 1.0, %v679_v48 }
 0x3f2   :  { %680 = vrcp.f32 %v325_v49 }
 0x3fc   :  { %v681_v50 = vpop.eup %680 }
 0x3fd   :  { %v329_v53 = vmul.f32 %v681_v50, %v181_v25 }
 0x460   :  { %v332_v51 = vpop.permute.xlu1 %331 }
 0x461   :  { %v334_v52 = vmul.f32 %v681_v50, %v332_v51 }
 0x463   :  { %336 = vrot.lane.b32.xlu0 %v334_v52, %s866_s22 }
 0x4d5   :  { %v337_v54 = vpop.permute.xlu0 %336 }
 0x4d6   :  { %v339_v55 = vadd.f32 %v337_v54, %v329_v53 }
 0x4d8   :  { %682 = vtanh.f32 %v339_v55 }
 0x4e2   :  { %v683_v56 = vpop.eup %682 }
 0x4e3   :  { %342 = vrot.lane.b32.xlu1 %v683_v56, %s857_s19 }
 0x555   :  { %v343_v57 = vpop.permute.xlu1 %342 }
 0x556   :  { %v345_v58 = vmul.f32 %v681_v50, %v343_v57 }
 0x558   :  { %v356_v59 = vpack.c.bf16 %v345_v58, %v345_v58 }
 0x55a   :  { %358 = vrot.lane.b32.xlu0 %v356_v59, %s866_s22 }
 0x5cc   :  { %v359_v60 = vpop.permute.xlu0 %358 }
 0x5cd   :  { %638 = vmatmul.mubr.msk.bf16.vlgmr.msra.gmra.mrb[4].mxu1 %vm115_vm1, %v359_v60 }
 0x6a0   :  { %v397_v1 = vpop.f32.mrb[4].mxu1 }
 0x6a1   :  { %v403_v2 = vadd.f32 %v397_v1, %v355_v0  ;;  %v639_v3 = vpop.f32.mrb[5].mxu1 }
 0x6a2   :  { %v400_v4 = vpop.f32.mrb[6].mxu1 }
 0x6a3   :  { %684 = vtanh.f32 %v403_v2  ;;  %v640_v5 = vpop.f32.mrb[7].mxu1  ;;  %v589_v7 = vmul.f32 -1.442695, %v403_v2 }
 0x6a5   :  { %686 = vpow2.f32 %v589_v7 }
 0x6ad   :  { %v685_v6 = vpop.eup %684 }
 0x6ae   :  { %413 = vrot.lane.b32.xlu1 %v685_v6, %s857_s19 }
 0x6af   :  { %v687_v8 = vpop.eup %686 }
 0x6b0   :  { %v407_v9 = vadd.f32 1.0, %v687_v8 }
 0x6b2   :  { %688 = vrcp.f32 %v407_v9 }
 0x6bc   :  { %v689_v10 = vpop.eup %688 }
 0x6bd   :  { %v411_v13 = vmul.f32 %v689_v10, %v339_v55 }
 0x720   :  { %v414_v11 = vpop.permute.xlu1 %413 }
 0x721   :  { %v416_v12 = vmul.f32 %v689_v10, %v414_v11 }
 0x723   :  { %418 = vrot.lane.b32.xlu0 %v416_v12, %s866_s22 }
 0x795   :  { %v419_v14 = vpop.permute.xlu0 %418 }
 0x796   :  { %v421_v15 = vadd.f32 %v419_v14, %v411_v13 }
 0x798   :  { %690 = vtanh.f32 %v421_v15 }
 0x7a2   :  { %v691_v16 = vpop.eup %690 }
 0x7a3   :  { %424 = vrot.lane.b32.xlu1 %v691_v16, %s857_s19 }
 0x815   :  { %v425_v17 = vpop.permute.xlu1 %424 }
 0x816   :  { %v427_v18 = vmul.f32 %v689_v10, %v425_v17 }
 0x818   :  { %v438_v19 = vpack.c.bf16 %v427_v18, %v427_v18 }
 0x81a   :  { %440 = vrot.lane.b32.xlu0 %v438_v19, %s866_s22 }
 0x88c   :  { %v441_v20 = vpop.permute.xlu0 %440 }
 0x88d   :  { %646 = vmatmul.mubr.msk.bf16.vlgmr.msra.gmra.mrb[8].mxu0 %vm115_vm1, %v441_v20 }
 0x960   :  { %v479_v25 = vpop.f32.mrb[8].mxu0 }
 0x961   :  { %v485_v26 = vadd.f32 %v479_v25, %v437_v24  ;;  %v647_v27 = vpop.f32.mrb[9].mxu0 }
 0x962   :  { %v482_v28 = vpop.f32.mrb[10].mxu0 }
 0x963   :  { %692 = vtanh.f32 %v485_v26  ;;  %v648_v29 = vpop.f32.mrb[11].mxu0  ;;  %v593_v34 = vmul.f32 -1.442695, %v485_v26 }
 0x965   :  { %694 = vpow2.f32 %v593_v34 }
 0x96d   :  { %v693_v30 = vpop.eup %692 }
 0x96e   :  { %495 = vrot.lane.b32.xlu1 %v693_v30, %s857_s19 }
 0x96f   :  { %v695_v35 = vpop.eup %694 }
 0x970   :  { %v489_v36 = vadd.f32 1.0, %v695_v35 }
 0x972   :  { %696 = vrcp.f32 %v489_v36 }
 0x97c   :  { %v697_v38 = vpop.eup %696 }
 0x97d   :  { %v493_v41 = vmul.f32 %v697_v38, %v421_v15 }
 0x992   :  { %259 = vmax.xlane.f32.xlu1 %v258_v33 }
 0x9e0   :  { %v496_v39 = vpop.permute.xlu1 %495 }
 0x9e1   :  { %v498_v40 = vmul.f32 %v697_v38, %v496_v39 }
 0x9e3   :  { %500 = vrot.lane.b32.xlu0 %v498_v40, %s866_s22 }
 0xa1f   :  { %v260_v37 = vpop.xlane.xlu1 %259 }
 0xa20   :  { %v261_v45 = vsub.f32 %v252_v32, %v260_v37 }
 0xa22   :  { %v262_v46 = vmul.f32 1.442695, %v261_v45 }
 0xa55   :  { %v501_v42 = vpop.permute.xlu0 %500 }
 0xa56   :  { %v503_v43 = vadd.f32 %v501_v42, %v493_v41 }
 0xa58   :  { %698 = vtanh.f32 %v503_v43 }
 0xa59   :  { %700 = vpow2.f32 %v262_v46 }
 0xa62   :  { %v699_v44 = vpop.eup %698 }
 0xa63   :  { %506 = vrot.lane.b32.xlu0 %v699_v44, %s857_s19  ;;  %v701_v47 = vpop.eup %700  ;;  %s868_s19 = smov [#allocation10]  }
 0xa64   :  { %v264_v48 = vsel %vm257_vm3, %v701_v47, 0.0  ;;  %s527_s14 = sshll.u32 %s868_s19, 4  ;;  %s528_s14 = int_to_ptr.vmem [resolvable:$true] %s527_s14 }
 0xa65   :  { %s780_s1 = scalar_lea.vmem %s528_s14, 32  ;;  %p785_p0 = scmp.lt.s32.totalorder %s528_s14, %s528_s14 }
 0xa66   :  { %p781_p13 = scmp.ne.s32.totalorder %s528_s14, %s780_s1  ;;  %p786_p1 = scmp.lt.s32.totalorder %s780_s1, %s780_s1 }
 0xa68   :  { %p787_p2 = por %p786_p1, %p785_p0 }
 0xa6a   :  { %p788_p3 = pnand %p787_p2, %p781_p13 }
 0xa82   :  { %265 = vadd.xlane.f32.xlu0 %v264_v48 }
 0xa98   :  { %517 = vrot.lane.b32.xlu0 %v503_v43, %s867_s4 }
 0xad5   :  { %v507_v49 = vpop.permute.xlu0 %506 }
 0xad6   :  { %v509_v50 = vmul.f32 %v697_v38, %v507_v49 }
 0xad8   :  { %511 = vrot.lane.b32.xlu1 %v509_v50, %s866_s22 }
 0xb0f   :  { %v266_v51 = vpop.xlane.xlu0 %265 }
 0xb10   :  { %702 = vlog2.f32 %v266_v51 }
 0xb13   :  { %v518_v52 = vpop.permute.xlu0 %517 }
 0xb14   :  { %520 = vst.msk [vmem:[#allocation13] sm:$0x3] %vm514_vm4, %v518_v52 }
 0xb1a   :  { %v703_v53 = vpop.eup %702 }
 0xb1b   :  { %v268_v54 = vmul.f32 0.6931472, %v703_v53 }
 0xb1d   :  { %v269_v55 = vsub.f32 %v261_v45, %v268_v54 }
 0xb1f   :  { %270 = vst [vmem:[#allocation10] sm:$0x3] %v269_v55 }
 0xb20   :  { %791 = shalt.err (!%p788_p3)
}
 0xb21   :  { %s792_s20 = scalar_lea.hbm %s1092_s7, 32 }
 0xb22   :  { %p793_p4 = scmp.ne.s32.totalorder %s1092_s7, %s792_s20  ;;  %p796_p5 = scmp.lt.u32.totalorder %s792_s20, %s1092_s7 }
 0xb24   :  { %p798_p6 = pnand %p796_p5, %p793_p4 }
 0xb26   :  { %801 = shalt.err (!%p798_p6)
}
 0xb27   :  { %530 = dma.vmem_to_hbm [thread:$0]  %s528_s14, 32, %s1092_s7, [#allocation4]  }
 0xb28   :  { %s869_s22 = smov [#allocation11]   ;;  %s870_s0 = smov [#allocation13]  }
 0xb29   :  { %s537_s6 = sshll.u32 %s869_s22, 4  ;;  %s547_s23 = sshll.u32 %s870_s0, 4  ;;  %s538_s6 = int_to_ptr.vmem [resolvable:$true] %s537_s6  ;;  %s548_s23 = int_to_ptr.vmem [resolvable:$true] %s547_s23 }
 0xb2a   :  { %s802_s24 = scalar_lea.vmem %s538_s6, 32  ;;  %p807_p8 = scmp.lt.s32.totalorder %s538_s6, %s538_s6 }
 0xb2b   :  { %p803_p7 = scmp.ne.s32.totalorder %s538_s6, %s802_s24  ;;  %p808_p9 = scmp.lt.s32.totalorder %s802_s24, %s802_s24 }
 0xb2d   :  { %p809_p10 = por %p808_p9, %p807_p8 }
 0xb2f   :  { %p810_p11 = pnand %p809_p10, %p803_p7 }
 0xb4a   :  { %v512_v56 = vpop.permute.xlu1 %511 }
 0xb4b   :  { %515 = vst.msk [vmem:[#allocation11] sm:$0x3] %vm514_vm4, %v512_v56 }
 0xb4c   :  { %813 = shalt.err (!%p810_p11)
}
 0xb4d   :  { %s814_s7 = scalar_lea.hbm %s1093_s8, 32 }
 0xb4e   :  { %p815_p12 = scmp.ne.s32.totalorder %s1093_s8, %s814_s7  ;;  %p818_p13 = scmp.lt.u32.totalorder %s814_s7, %s1093_s8 }
 0xb50   :  { %p820_p0 = pnand %p818_p13, %p815_p12 }
 0xb52   :  { %823 = shalt.err (!%p820_p0)
}
 0xb53   :  { %540 = dma.vmem_to_hbm [thread:$0]  %s538_s6, 32, %s1093_s8, [#allocation12]  }
 0xb54   :  { %s824_s2 = scalar_lea.vmem %s548_s23, 32  ;;  %p829_p2 = scmp.lt.s32.totalorder %s548_s23, %s548_s23 }
 0xb55   :  { %p825_p1 = scmp.ne.s32.totalorder %s548_s23, %s824_s2  ;;  %p830_p3 = scmp.lt.s32.totalorder %s824_s2, %s824_s2 }
 0xb57   :  { %p831_p4 = por %p830_p3, %p829_p2 }
 0xb59   :  { %p832_p5 = pnand %p831_p4, %p825_p1 }
 0xb5b   :  { %835 = shalt.err (!%p832_p5)
}
 0xb5c   :  { %s836_s19 = scalar_lea.hbm %s1094_s9, 32 }
 0xb5d   :  { %p837_p6 = scmp.ne.s32.totalorder %s1094_s9, %s836_s19  ;;  %p840_p7 = scmp.lt.u32.totalorder %s836_s19, %s1094_s9 }
 0xb5f   :  { %p842_p8 = pnand %p840_p7, %p837_p6 }
 0xb61   :  { %845 = shalt.err (!%p842_p8)
}
 0xb62   :  { %550 = dma.vmem_to_hbm [thread:$0]  %s548_s23, 32, %s1094_s9, [#allocation12]  }
 0xb63   :  { %852 = dma.done.wait [#allocation4], 32  }
 0xb64   :  { %853 = vsyncadd [#allocation4], 4294967264 }
 0xb65   :  { %854 = dma.done.wait [#allocation12], 64  }
 0xb66   :  { %855 = vsyncadd [#allocation12], 4294967232 }
 0xb67   :  { %560 = vsyncpa [#allocation3], 1 }
 0xb68   :  { %561 = vsyncpa [#allocation8], 1 }
 0xb69   :  { %562 = vsyncpa [#allocation4], 1 }
 0xb6a   :  { %563 = vsyncpa [#allocation12], 1 }
 0xb6b   :  { %564 = vsyncpa [#allocation5], 1 }

</bundles_post_ra>
